<compile_context>
chip_gen: v5e
topology: v5e:2x2
jax: 0.10.0
libtpu: 0.0.40
codegen_flags: <defaults>
</compile_context>

<pallas_src>
import functools
from typing import NamedTuple, Optional

import jax
import jax.numpy as jnp
from jax.experimental import pallas as pl
from jax.experimental.pallas import tpu as pltpu


# ---------------------------------------------------------------------------
# helpers
# ---------------------------------------------------------------------------

def _cdiv(a, b):
    return -(-a // b)


def _round_up(n, m):
    return ((n + m - 1) // m) * m


def _apply_activation(y, activation):
    if activation is None:            # nn.Identity()
        return y
    if activation == "Sigmoid":
        return jax.nn.sigmoid(y)
    if activation == "Tanh":
        return jnp.tanh(y)
    if activation == "ReLU":
        return jnp.maximum(y, 0.0)
    raise ValueError(f"unsupported activation: {activation}")


def _vmem_budget_bytes():
    """Per-generation VMEM budget (physical capacity minus headroom)."""
    cap = None
    try:
        info = pltpu.get_tpu_info()
        cap = getattr(info, "vmem_capacity_bytes", None)
    except Exception:
        cap = None
    if cap is None:
        cap = 64 << 20  # conservative fallback = v7x per-TensorCore VMEM
    # Headroom for Mosaic internal scratch; never exceed 96 MiB even on 128 MiB parts.
    return max(32 << 20, min(cap - (16 << 20), 96 << 20))


def _choose_tiles(M, d_model, d_output, x_item, w_item, out_item, row_unit,
                  budget, fuse_sum):
    """Pick (tn, tm): N tile only for very wide outputs, tm as large as VMEM allows."""
    w_col_bytes = d_model * w_item
    if d_output <= 512 or 2 * d_output * w_col_bytes <= budget // 2:
        tn = d_output                       # whole weight resident (common case)
    else:
        tn = 512                            # vocab-style widths: lane-dense N tiles
        while tn > 128 and 2 * tn * w_col_bytes > budget // 2:
            tn //= 2
    n_out_blk = 1 if fuse_sum else tn

    # Largest tm (multiple of row_unit, <= 1024) such that double-buffered x and
    # out tiles fit next to the (conservatively double-buffered) weight + bias.
    avail = budget - 2 * d_model * tn * w_item - 2 * tn * 4
    per_row = 2 * d_model * x_item + 2 * n_out_blk * out_item
    tm = max(row_unit, min(1024, (max(avail, 0) // per_row) // row_unit * row_unit))
    # Megacore (v7x has 2 TensorCores): keep >= 2 row blocks when M allows so the
    # "parallel" M axis can actually be sharded across cores.
    tm = min(tm, _round_up(_cdiv(M, 2), row_unit))
    tm = max(tm, row_unit)
    return tn, tm


# ---------------------------------------------------------------------------
# kernels
# ---------------------------------------------------------------------------

def _forward_kernel(x_ref, w_ref, b_ref, o_ref, *, activation):
    # MXU matmul with f32 accumulation; bias add + activation in f32 on VPU/EUP.
    y = jnp.dot(x_ref[...], w_ref[...], preferred_element_type=jnp.float32)
    y = y + b_ref[...]                      # bias is prepared as f32
    o_ref[...] = _apply_activation(y, activation).astype(o_ref.dtype)


def _score_kernel(x_ref, w_ref, b_ref, o_ref, *, activation, tn, d_output):
    # Fused score(): act(x @ W + b) summed over d_output, accumulated across the
    # (arbitrary) N grid axis into a resident [tm, 1] f32 output block.
    j = pl.program_id(1)

    @pl.when(j == 0)
    def _init():
        o_ref[...] = jnp.zeros_like(o_ref)

    y = jnp.dot(x_ref[...], w_ref[...], preferred_element_type=jnp.float32)
    y = y + b_ref[...]
    y = _apply_activation(y, activation)
    if d_output % tn != 0:
        # Ragged last N block: mask columns past d_output so OOB weight/bias
        # garbage never enters the accumulated sum.
        col = jax.lax.broadcasted_iota(jnp.int32, y.shape, dimension=1)
        y = jnp.where(j * tn + col < d_output, y, 0.0)
    o_ref[...] += jnp.sum(y, axis=-1, keepdims=True).astype(o_ref.dtype)


# ---------------------------------------------------------------------------
# pallas_call driver
# ---------------------------------------------------------------------------

def _linear_2d(x2d, w_t, b2d, activation, *, fuse_sum, out_dtype):
    M, d_model = x2d.shape
    d_output = w_t.shape[1]
    x_item = jnp.dtype(x2d.dtype).itemsize
    w_item = jnp.dtype(w_t.dtype).itemsize
    out_item = jnp.dtype(out_dtype).itemsize
    row_unit = 16 if x_item < 4 else 8      # sublane packing for sub-32-bit inputs

    budget = _vmem_budget_bytes()
    tn, tm = _choose_tiles(M, d_model, d_output, x_item, w_item, out_item,
                           row_unit, budget, fuse_sum)
    m_blocks = _cdiv(M, tm)
    n_blocks = _cdiv(d_output, tn)
    n_out_blk = 1 if fuse_sum else tn

    footprint = (2 * tm * d_model * x_item + 2 * d_model * tn * w_item
                 + 2 * tn * 4 + 2 * tm * n_out_blk * out_item)
    vmem_limit = min(budget, max(32 << 20, 2 * footprint + (8 << 20)))

    if fuse_sum:
        kernel = functools.partial(_score_kernel, activation=activation,
                                   tn=tn, d_output=d_output)
        out_spec = pl.BlockSpec((tm, 1), lambda i, j: (i, 0))
        out_shape = jax.ShapeDtypeStruct((M, 1), out_dtype)
        dim_sem = ("parallel", "arbitrary")   # output resident across the N axis
    else:
        kernel = functools.partial(_forward_kernel, activation=activation)
        out_spec = pl.BlockSpec((tm, tn), lambda i, j: (i, j))
        out_shape = jax.ShapeDtypeStruct((M, d_output), out_dtype)
        dim_sem = ("parallel", "parallel")

    # No HBM padding of x: ragged tail row blocks are handled by Pallas (OOB reads
    # padded, OOB writes discarded); there is no cross-row reduction.
    x_spec = pl.BlockSpec((tm, d_model), lambda i, j: (i, 0))
    # TODO(synk): on v7x, if a DMA gap is still visible at the chosen tm, sweep
    # pipeline_mode=pl.Buffered(3) on this x spec.
    # TODO(synk): on v5e, pad d_output to a multiple of 128 in the wrapper when it
    # is close to (but not a multiple of) 128, for lane-dense unmasked stores.

    def run(single_buffer_invariants):
        if single_buffer_invariants:
            w_spec = pl.BlockSpec((d_model, tn), lambda i, j: (0, j),
                                  pipeline_mode=pl.Buffered(1))
            b_spec = pl.BlockSpec((1, tn), lambda i, j: (0, j),
                                  pipeline_mode=pl.Buffered(1))
        else:
            w_spec = pl.BlockSpec((d_model, tn), lambda i, j: (0, j))
            b_spec = pl.BlockSpec((1, tn), lambda i, j: (0, j))
        return pl.pallas_call(
            kernel,
            out_shape=out_shape,
            grid_spec=pltpu.PrefetchScalarGridSpec(
                num_scalar_prefetch=0,
                grid=(m_blocks, n_blocks),
                in_specs=[x_spec, w_spec, b_spec],
                out_specs=out_spec,
            ),
            compiler_params=pltpu.CompilerParams(
                dimension_semantics=dim_sem,
                vmem_limit_bytes=vmem_limit),
        )(x2d, w_t, b2d)

    if n_blocks == 1:
        # Weight/bias are truly grid-invariant: single-buffer them to halve their
        # VMEM footprint; fall back if this Pallas build rejects Buffered(1) here.
        try:
            return run(True)
        except Exception:
            return run(False)
    return run(False)


# ---------------------------------------------------------------------------
# public API (mirrors OutputLayer.forward / OutputLayer.score)
# ---------------------------------------------------------------------------

class OutputLayerParams(NamedTuple):
    w_t: jax.Array     # [d_model, d_output], compute dtype
    b2d: jax.Array     # [1, d_output], f32
    w_sum: jax.Array   # [d_model, 1], compute dtype (score with Identity activation)
    b_sum: jax.Array   # [1, 1], f32


def prepare_output_layer_params(weight, bias,
                                compute_dtype: Optional[jnp.dtype] = jnp.bfloat16):
    """Hoist weight transpose / cast / column-sum out of the hot path. Call ONCE.

    weight: [d_output, d_model] (PyTorch nn.Linear layout); bias: [d_output].
    Default compute dtype is bf16 (halves HBM traffic on this memory-bound op;
    MXU still accumulates in f32). Pass compute_dtype=jnp.float32 to opt out.
    """
    w_t = jnp.asarray(weight).T
    b2d = jnp.asarray(bias).reshape(1, -1).astype(jnp.float32)
    w_sum = w_t.astype(jnp.float32).sum(axis=1, keepdims=True)
    b_sum = b2d.sum(axis=1, keepdims=True)
    if compute_dtype is not None:
        w_t = w_t.astype(compute_dtype)
        w_sum = w_sum.astype(compute_dtype)
    return OutputLayerParams(w_t, b2d, w_sum, b_sum)


def output_layer_forward(x, params: OutputLayerParams, activation=None):
    """x: [B, S, d_model] -> [B, S, d_output] (in x.dtype)."""
    B, S, d_model = x.shape
    d_output = params.w_t.shape[1]
    x2d = x.reshape(B * S, d_model).astype(params.w_t.dtype)
    out2d = _linear_2d(x2d, params.w_t, params.b2d, activation,
                       fuse_sum=False, out_dtype=x.dtype)
    return out2d.reshape(B, S, d_output)


def output_layer_score(x, params: OutputLayerParams, activation=None):
    """Mirrors OutputLayer.score: sum over d_output if d_output > 1 (f32 output)."""
    B, S, d_model = x.shape
    d_output = params.w_t.shape[1]
    if d_output == 1:
        # PyTorch module returns forward(x) unchanged (shape [B, S, 1]) here.
        return output_layer_forward(x, params, activation)
    x2d = x.reshape(B * S, d_model).astype(params.w_t.dtype)
    if activation is None:
        # Identity activation: the sum over d_output commutes with the matmul, so
        # use the prepare-time folded weight [d_model, 1] and the d_output=1 path.
        out2d = _linear_2d(x2d, params.w_sum, params.b_sum, None,
                           fuse_sum=True is False, out_dtype=jnp.float32) \
            if False else _linear_2d(x2d, params.w_sum, params.b_sum, None,
                                     fuse_sum=False, out_dtype=jnp.float32)
    else:
        out2d = _linear_2d(x2d, params.w_t, params.b2d, activation,
                           fuse_sum=True, out_dtype=jnp.float32)
    return out2d.reshape(B, S)


# ---------------------------------------------------------------------------
# self-test
# ---------------------------------------------------------------------------

if __name__ == "__main__":
    # Small shapes consistent with the module; slate_length=7 -> M=14 exercises the
    # ragged (non-tile-aligned) row path with no HBM padding.
    batch_size, slate_length, d_model, d_output = 2, 7, 32, 4

    key = jax.random.PRNGKey(0)
    kx, kw, kb = jax.random.split(key, 3)

    x = jax.random.normal(kx, (batch_size, slate_length, d_model), jnp.float32)
    bound = 1.0 / jnp.sqrt(d_model)
    weight = jax.random.uniform(kw, (d_output, d_model), jnp.float32, -bound, bound)
    bias = jax.random.uniform(kb, (d_output,), jnp.float32, -bound, bound)

    ref = x @ weight.T + bias

    # f32 compute path (opt-out of bf16) — tight tolerance.
    p32 = prepare_output_layer_params(weight, bias, compute_dtype=jnp.float32)

    out = jax.block_until_ready(output_layer_forward(x, p32, activation=None))
    assert out.shape == (batch_size, slate_length, d_output)
    assert jnp.allclose(out, ref, atol=1e-5, rtol=1e-5)

    out_sig = jax.block_until_ready(output_layer_forward(x, p32, activation="Sigmoid"))
    assert jnp.allclose(out_sig, jax.nn.sigmoid(ref), atol=1e-5, rtol=1e-5)

    # score() with Identity activation -> folded-weight d_output=1 path.
    score = jax.block_until_ready(output_layer_score(x, p32, activation=None))
    assert score.shape == (batch_size, slate_length)
    assert jnp.allclose(score, ref.sum(-1), atol=1e-5, rtol=1e-5)

    # score() with an activation -> fused in-kernel reduction path.
    score_sig = jax.block_until_ready(output_layer_score(x, p32, activation="Sigmoid"))
    assert score_sig.shape == (batch_size, slate_length)
    assert jnp.allclose(score_sig, jax.nn.sigmoid(ref).sum(-1), atol=1e-5, rtol=1e-5)

    # Default bf16 compute path (f32 accumulation / bias / activation) — loose tol.
    pbf = prepare_output_layer_params(weight, bias)
    out_bf = jax.block_until_ready(output_layer_forward(x, pbf, activation=None))
    assert out_bf.shape == (batch_size, slate_length, d_output)
    assert jnp.allclose(out_bf, ref, atol=1e-1, rtol=5e-2)

    print("KERNEL_OK")
</pallas_src>

<mosaic_0001>
module attributes {stable_mosaic.version = 11 : i64} {
  func.func @_forward_kernel(%arg0: i32, %arg1: i32, %arg2: memref<8x32xf32, #tpu.memory_space<vmem>>, %arg3: memref<32x4xf32, #tpu.memory_space<vmem>>, %arg4: memref<1x4xf32, #tpu.memory_space<vmem>>, %arg5: memref<8x4xf32, #tpu.memory_space<vmem>>) attributes {dimension_semantics = [#tpu.dimension_semantics<parallel>, #tpu.dimension_semantics<parallel>], iteration_bounds = array<i64: 2, 1>, scalar_prefetch = 0 : i64, scratch_operands = 0 : i64, tpu.core_type = #tpu.core_type<tc>, window_params = [{transform_indices = @transform_0, window_bounds = array<i64: 8, 32>}, {pipeline_mode = #tpu.pipeline_mode<synchronous>, transform_indices = @transform_1, window_bounds = array<i64: 32, 4>}, {pipeline_mode = #tpu.pipeline_mode<synchronous>, transform_indices = @transform_2, window_bounds = array<i64: 1, 4>}, {transform_indices = @transform_3, window_bounds = array<i64: 8, 4>}]} {
    %c0 = arith.constant 0 : index
    %c0_0 = arith.constant 0 : index
    %0 = vector.load %arg2[%c0, %c0_0] : memref<8x32xf32, #tpu.memory_space<vmem>>, vector<8x32xf32>
    %c0_1 = arith.constant 0 : index
    %c0_2 = arith.constant 0 : index
    %1 = vector.load %arg3[%c0_1, %c0_2] : memref<32x4xf32, #tpu.memory_space<vmem>>, vector<32x4xf32>
    %cst = arith.constant dense<0.000000e+00> : vector<8x4xf32>
    %2 = tpu.matmul %0, %1, %cst {dimension_numbers = #tpu.dot_dimension_numbers<[1], [0], [0], [1], [0, 0, 1, 1], [], []>} : vector<8x32xf32>, vector<32x4xf32>, vector<8x4xf32> -> vector<8x4xf32>
    %c0_3 = arith.constant 0 : index
    %c0_4 = arith.constant 0 : index
    %3 = vector.load %arg4[%c0_3, %c0_4] : memref<1x4xf32, #tpu.memory_space<vmem>>, vector<1x4xf32>
    %4 = vector.broadcast %3 : vector<1x4xf32> to vector<8x4xf32>
    %5 = arith.addf %2, %4 : vector<8x4xf32>
    %c0_5 = arith.constant 0 : index
    %c0_6 = arith.constant 0 : index
    %6 = vector.load %arg5[%c0_5, %c0_6] : memref<8x4xf32, #tpu.memory_space<vmem>>, vector<8x4xf32>
    tpu.vector_store %arg5[%c0_5, %c0_6], %5 {strides = array<i32>} : memref<8x4xf32, #tpu.memory_space<vmem>>, vector<8x4xf32>,
    return
  }
  func.func @transform_0(%arg0: i32, %arg1: i32) -> (i32, i32) {
    %c0_i32 = arith.constant 0 : i32
    %c0_i32_0 = arith.constant 0 : i32
    return %arg0, %c0_i32 : i32, i32
  }
  func.func @transform_1(%arg0: i32, %arg1: i32) -> (i32, i32) {
    %c0_i32 = arith.constant 0 : i32
    %c0_i32_0 = arith.constant 0 : i32
    return %c0_i32, %arg1 : i32, i32
  }
  func.func @transform_2(%arg0: i32, %arg1: i32) -> (i32, i32) {
    %c0_i32 = arith.constant 0 : i32
    %c0_i32_0 = arith.constant 0 : i32
    return %c0_i32, %arg1 : i32, i32
  }
  func.func @transform_3(%arg0: i32, %arg1: i32) -> (i32, i32) {
    %c0_i32 = arith.constant 0 : i32
    return %arg0, %arg1 : i32, i32
  }
}

module attributes {stable_mosaic.version = 11 : i64} {
  func.func @_forward_kernel(%arg0: i32, %arg1: i32, %arg2: memref<8x32xf32, #tpu.memory_space<vmem>>, %arg3: memref<32x4xf32, #tpu.memory_space<vmem>>, %arg4: memref<1x4xf32, #tpu.memory_space<vmem>>, %arg5: memref<8x4xf32, #tpu.memory_space<vmem>>) attributes {dimension_semantics = [#tpu.dimension_semantics<parallel>, #tpu.dimension_semantics<parallel>], iteration_bounds = array<i64: 2, 1>, scalar_prefetch = 0 : i64, scratch_operands = 0 : i64, tpu.core_type = #tpu.core_type<tc>, window_params = [{transform_indices = @transform_0, window_bounds = array<i64: 8, 32>}, {transform_indices = @transform_1, window_bounds = array<i64: 32, 4>}, {transform_indices = @transform_2, window_bounds = array<i64: 1, 4>}, {transform_indices = @transform_3, window_bounds = array<i64: 8, 4>}]} {
    %c0 = arith.constant 0 : index
    %c0_0 = arith.constant 0 : index
    %0 = vector.load %arg2[%c0, %c0_0] : memref<8x32xf32, #tpu.memory_space<vmem>>, vector<8x32xf32>
    %c0_1 = arith.constant 0 : index
    %c0_2 = arith.constant 0 : index
    %1 = vector.load %arg3[%c0_1, %c0_2] : memref<32x4xf32, #tpu.memory_space<vmem>>, vector<32x4xf32>
    %cst = arith.constant dense<0.000000e+00> : vector<8x4xf32>
    %2 = tpu.matmul %0, %1, %cst {dimension_numbers = #tpu.dot_dimension_numbers<[1], [0], [0], [1], [0, 0, 1, 1], [], []>} : vector<8x32xf32>, vector<32x4xf32>, vector<8x4xf32> -> vector<8x4xf32>
    %c0_3 = arith.constant 0 : index
    %c0_4 = arith.constant 0 : index
    %3 = vector.load %arg4[%c0_3, %c0_4] : memref<1x4xf32, #tpu.memory_space<vmem>>, vector<1x4xf32>
    %4 = vector.broadcast %3 : vector<1x4xf32> to vector<8x4xf32>
    %5 = arith.addf %2, %4 : vector<8x4xf32>
    %c0_5 = arith.constant 0 : index
    %c0_6 = arith.constant 0 : index
    %6 = vector.load %arg5[%c0_5, %c0_6] : memref<8x4xf32, #tpu.memory_space<vmem>>, vector<8x4xf32>
    tpu.vector_store %arg5[%c0_5, %c0_6], %5 {strides = array<i32>} : memref<8x4xf32, #tpu.memory_space<vmem>>, vector<8x4xf32>,
    return
  }
  func.func @transform_0(%arg0: i32, %arg1: i32) -> (i32, i32) {
    %c0_i32 = arith.constant 0 : i32
    %c0_i32_0 = arith.constant 0 : i32
    return %arg0, %c0_i32 : i32, i32
  }
  func.func @transform_1(%arg0: i32, %arg1: i32) -> (i32, i32) {
    %c0_i32 = arith.constant 0 : i32
    %c0_i32_0 = arith.constant 0 : i32
    return %c0_i32, %arg1 : i32, i32
  }
  func.func @transform_2(%arg0: i32, %arg1: i32) -> (i32, i32) {
    %c0_i32 = arith.constant 0 : i32
    %c0_i32_0 = arith.constant 0 : i32
    return %c0_i32, %arg1 : i32, i32
  }
  func.func @transform_3(%arg0: i32, %arg1: i32) -> (i32, i32) {
    %c0_i32 = arith.constant 0 : i32
    return %arg0, %arg1 : i32, i32
  }
}

</mosaic_0001>

<bundles_post_ra>
// kernel: tpu_custom_call.1
= control target key start
LH: loop header
LB: loop body
LE: loop exit
PB: predicated region body
PF: predicated region fallthrough
CT: control target
= control target key end

     0   :  { %s432_s12 = smov 0   ;;  %s434_s13 = smov 0   ;;  %s477_s0 = inlined_call_operand.vmem [shape: f32[14,32], index: 0, kind: input, shape index: {}]   ;;  %s478_s1 = inlined_call_operand.vmem [shape: f32[32,4], index: 1, kind: input, shape index: {}]   ;;  %s479_s2 = inlined_call_operand.vmem [shape: f32[1,4], index: 2, kind: input, shape index: {}]   ;;  %s480_s3 = inlined_call_operand.vmem [shape: f32[14,4], index: 3, kind: output, shape index: {}]  }
   0x1   :  { %s436_s14 = smov 0  }
   0x2 LB: > { %s25_s15 = sadd.s32 1, %s406_s13  ;;  %p357_p0 = scmp.ge.s32.totalorder %s410_s14, 1  ;;  %s410_s14 = sphi %s436_s14, %s13_s14   ;;  %s406_s13 = sphi %s434_s13, %s482_s13   ;;  %s402_s12 = sphi %s432_s12, %s481_s12  }
   0x3   : > { %p27_p1 = scmp.ge.s32.totalorder %s25_s15, 2  ;;  %p167_p2 = scmp.lt.s32.totalorder %s410_s14, 3 }
   0x5   : > { %s484_s15 = smov (%p27_p1, %s25_s15), 0  ;;  %p168_p3 = pnand %p357_p0, %p167_p2 }
   0x6   : > { %p199_p4 = scmp.lt.s32.totalorder (!%p168_p3), %s402_s12, 1 }
   0x7   : > { %171 = sbr.rel (%p168_p3) target bundleno = 149 (0x95), region = 32 }
   0xc   : > { %v221_v0 = vld [vmem:[%s478_s1 + $0x18] sm:$0xff]  ;;  %v220_v1 = vld [vmem:[%s478_s1 + $0x10] sm:$0xff]  ;;  %v219_v2 = vld [vmem:[%s478_s1 + $0x8] sm:$0xff]  ;;  %s486_s12 = smov (!%p199_p4, %s402_s12), 1  ;;  %vm226_vm0 = vcmask 261120   ;;  %vm250_vm1 = vcmask 31744  }
   0xd   : > { %242 = vmatpush.msra.mxu0 %v221_v0  ;;  %v218_v3 = vld [vmem:[%s478_s1] sm:$0xff]  ;;  %s358_s24 = sshll.u32 %s486_s12, 3 }
   0xe   : > { %s202_s27 = scalar_lea.vmem %s477_s0, %s358_s24  ;;  %v387_v5 = vld [vmem:[%s479_s2] ss:$0 sm:$0xff]  ;;  %s216_s5 = scalar_lea.vmem %s480_s3, %s358_s24 }
   0xf   : > { %243 = vmatpush.msra.mxu0 %v220_v1  ;;  %v217_v4 = vld [vmem:[%s202_s27] sm:$0xff] }
  0x11   : > { %244 = vmatpush.msra.mxu0 %v219_v2 }
  0x13   : > { %245 = vmatpush.msra.mxu0 %v218_v3 }
  0x14   : > { %360 = vmatmul.msk.f32.vlgmr.msra.gmra.mxu0 %vm226_vm0, %v217_v4 }
  0x91   : > { %v247_v6 = vpop.f32.mrf.mxu0 }
  0x92   : > { %v248_v7 = vadd.f32 %v387_v5, %v247_v6 }
  0x94   : > { %251 = vst.msk [vmem:[%s216_s5] sm:$0xff] %vm250_vm1, %v248_v7 }
  0x95 PF: > { %s13_s14 = sadd.s32 1, %s410_s14   ;;  %s481_s12 = smov %s406_s13 }
  0x96   : > { %p10_p5 = scmp.ge.s32.totalorder %s13_s14, 4   ;;  %s482_s13 = smov %s484_s15 }
  0x98   :  { %12 = sbr.rel (!%p10_p5) target bundleno = 2 (0x2), region = 68 }

// kernel: tpu_custom_call.1
= control target key start
LH: loop header
LB: loop body
LE: loop exit
PB: predicated region body
PF: predicated region fallthrough
CT: control target
= control target key end

     0   :  { %s432_s12 = smov 0   ;;  %s434_s13 = smov 0   ;;  %s477_s0 = inlined_call_operand.vmem [shape: f32[14,32], index: 0, kind: input, shape index: {}]   ;;  %s478_s1 = inlined_call_operand.vmem [shape: f32[32,4], index: 1, kind: input, shape index: {}]   ;;  %s479_s2 = inlined_call_operand.vmem [shape: f32[1,4], index: 2, kind: input, shape index: {}]   ;;  %s480_s3 = inlined_call_operand.vmem [shape: f32[14,4], index: 3, kind: output, shape index: {}]  }
   0x1   :  { %s436_s14 = smov 0  }
   0x2 LB: > { %s25_s15 = sadd.s32 1, %s406_s13  ;;  %p357_p0 = scmp.ge.s32.totalorder %s410_s14, 1  ;;  %s410_s14 = sphi %s436_s14, %s13_s14   ;;  %s406_s13 = sphi %s434_s13, %s482_s13   ;;  %s402_s12 = sphi %s432_s12, %s481_s12  }
   0x3   : > { %p27_p1 = scmp.ge.s32.totalorder %s25_s15, 2  ;;  %p167_p2 = scmp.lt.s32.totalorder %s410_s14, 3 }
   0x5   : > { %s484_s15 = smov (%p27_p1, %s25_s15), 0  ;;  %p168_p3 = pnand %p357_p0, %p167_p2 }
   0x6   : > { %p199_p4 = scmp.lt.s32.totalorder (!%p168_p3), %s402_s12, 1 }
   0x7   : > { %171 = sbr.rel (%p168_p3) target bundleno = 149 (0x95), region = 32 }
   0xc   : > { %v221_v0 = vld [vmem:[%s478_s1 + $0x18] sm:$0xff]  ;;  %v220_v1 = vld [vmem:[%s478_s1 + $0x10] sm:$0xff]  ;;  %v219_v2 = vld [vmem:[%s478_s1 + $0x8] sm:$0xff]  ;;  %s486_s12 = smov (!%p199_p4, %s402_s12), 1  ;;  %vm226_vm0 = vcmask 261120   ;;  %vm250_vm1 = vcmask 31744  }
   0xd   : > { %242 = vmatpush.msra.mxu0 %v221_v0  ;;  %v218_v3 = vld [vmem:[%s478_s1] sm:$0xff]  ;;  %s358_s24 = sshll.u32 %s486_s12, 3 }
   0xe   : > { %s202_s27 = scalar_lea.vmem %s477_s0, %s358_s24  ;;  %v387_v5 = vld [vmem:[%s479_s2] ss:$0 sm:$0xff]  ;;  %s216_s5 = scalar_lea.vmem %s480_s3, %s358_s24 }
   0xf   : > { %243 = vmatpush.msra.mxu0 %v220_v1  ;;  %v217_v4 = vld [vmem:[%s202_s27] sm:$0xff] }
  0x11   : > { %244 = vmatpush.msra.mxu0 %v219_v2 }
  0x13   : > { %245 = vmatpush.msra.mxu0 %v218_v3 }
  0x14   : > { %360 = vmatmul.msk.f32.vlgmr.msra.gmra.mxu0 %vm226_vm0, %v217_v4 }
  0x91   : > { %v247_v6 = vpop.f32.mrf.mxu0 }
  0x92   : > { %v248_v7 = vadd.f32 %v387_v5, %v247_v6 }
  0x94   : > { %251 = vst.msk [vmem:[%s216_s5] sm:$0xff] %vm250_vm1, %v248_v7 }
  0x95 PF: > { %s13_s14 = sadd.s32 1, %s410_s14   ;;  %s481_s12 = smov %s406_s13 }
  0x96   : > { %p10_p5 = scmp.ge.s32.totalorder %s13_s14, 4   ;;  %s482_s13 = smov %s484_s15 }
  0x98   :  { %12 = sbr.rel (!%p10_p5) target bundleno = 2 (0x2), region = 68 }

</bundles_post_ra>
